<compile_context>
chip_gen: v6e
topology: v6e:2x2x1
jax: 0.10.0
libtpu: 0.0.40
codegen_flags: <defaults>
</compile_context>

<pallas_src>
import functools

import jax
import jax.numpy as jnp
from jax.experimental import pallas as pl
from jax.experimental.pallas import tpu as pltpu


def _lane_dense_shape(T, M, max_lanes=8192):
    """Free (contiguous, no-pad/no-copy) reshape (T, M) -> (R, C), C % 128 == 0."""
    if M % 128 == 0:
        return T, M
    n = T * M
    best = None
    c = 128
    while c <= max_lanes:
        if n % c == 0:
            best = c
        c += 128
    if best is None:
        # TODO(synk): flatten to 1-D + in-kernel lane mask on the tail so
        # shapes with T*M not a multiple of 128 still run fully lane-dense.
        return T, M
    return n // best, best


def _hw_params():
    """(vmem_limit_bytes, parallel_groups) for the attached TPU generation."""
    kind = ""
    try:
        kind = jax.devices()[0].device_kind.lower()
    except Exception:
        pass
    if "v7" in kind:                        # v7x: 64 MiB VMEM/TC, 2 TCs/chip
        return 48 * 1024 * 1024, 2
    if "v4" in kind or "v5p" in kind:       # megacore: 2 TCs behind one device
        return 64 * 1024 * 1024, 2
    return 64 * 1024 * 1024, 1              # v5e / v6e: 128 MiB VMEM, 1 TC


def _entropy_kernel(x_ref, o_ref, acc_ref, *, eps, n_rows, tile_rows,
                    blocks_per_group, n_full_blocks, need_mask):
    j = pl.program_id(1)                        # row block within the group

    @pl.when(j == 0)
    def _init():
        acc_ref[...] = jnp.zeros_like(acc_ref)

    x = x_ref[...].astype(jnp.float32)          # (tile_rows, C)
    ne = -x * jnp.log(x + jnp.float32(eps))     # VPU mul/neg + EUP log

    tr, c = ne.shape
    acc_rows = acc_ref.shape[0]

    def _accumulate(v):
        # Pure-VPU, layout-preserving fold onto the small accumulator: group
        # rows by sublane block of 8 and add vreg-wise (no XLU in the loop).
        if acc_rows != tr:
            v = v.reshape(tr // acc_rows, acc_rows, c).sum(axis=0)
        acc_ref[...] += v

    if need_mask:
        blk = pl.program_id(0) * blocks_per_group + j

        @pl.when(blk < n_full_blocks)           # interior blocks: no masking
        def _full():
            _accumulate(ne)

        @pl.when(blk >= n_full_blocks)          # tail / clamped-duplicate blocks
        def _tail():
            # True select: any NaN/Inf from log() on OOB stale rows is discarded.
            row = blk * tile_rows + jax.lax.broadcasted_iota(
                jnp.int32, ne.shape, 0)
            _accumulate(jnp.where(row < n_rows, ne, 0.0))
    else:
        _accumulate(ne)

    @pl.when(j == pl.num_programs(1) - 1)
    def _finalize():
        # Lane-dense VMEM dump; cross-lane reduce and /T happen in the wrapper,
        # keeping XLU + scalar-store work out of the pipelined loop epilogue.
        o_ref[0] = acc_ref[...]


def entropy_loss(x, eps=1e-12, *, target_block_bytes=16 * 1024 * 1024,
                 max_lanes=8192, num_groups=None):
    """x: (T, M) attention weights (f32 or bf16). Returns scalar f32 loss."""
    T, M = x.shape

    # Lane-dense working view (free reshape when possible; no data copy/pad).
    R, C = _lane_dense_shape(T, M, max_lanes)
    if (R, C) != (T, M):
        x = x.reshape(R, C)

    itemsize = jnp.dtype(x.dtype).itemsize
    pack = max(8, 32 // itemsize)               # sublane packing: 8/16/32 rows

    vmem_limit, num_tc = _hw_params()
    # Double-buffered input blocks must fit under the scoped VMEM limit with
    # headroom for the accumulator, output and compiler scratch.
    max_block_bytes = max(1 << 20, (vmem_limit - (8 << 20)) // 2)
    blk_bytes = min(target_block_bytes, max_block_bytes)

    tr = max(pack, (blk_bytes // (C * itemsize)) // pack * pack)
    if tr >= R:
        tr = R                                   # full dim -> always legal
    n_blocks = pl.cdiv(R, tr)

    # Parallel groups of row blocks (one per TensorCore); on single-TC chips
    # P=1 so we never pay for duplicated clamped blocks or extra masking.
    P = num_groups if num_groups is not None else num_tc
    P = max(1, min(P, n_blocks))
    bpg = pl.cdiv(n_blocks, P)
    n_full_blocks = R // tr                      # blocks fully inside [0, R)
    need_mask = (P * bpg * tr != R)              # static, compile-time

    acc_rows = 8 if tr % 8 == 0 else tr          # (8, C) accumulator if possible

    kernel = functools.partial(
        _entropy_kernel, eps=eps, n_rows=R, tile_rows=tr,
        blocks_per_group=bpg, n_full_blocks=n_full_blocks, need_mask=need_mask)

    n_elems = R * C
    cost = pl.CostEstimate(
        flops=3 * n_elems,
        transcendentals=n_elems,
        bytes_accessed=n_elems * itemsize + P * acc_rows * C * 4)

    partials = pl.pallas_call(
        kernel,
        out_shape=jax.ShapeDtypeStruct((P, acc_rows, C), jnp.float32),
        grid_spec=pltpu.PrefetchScalarGridSpec(
            num_scalar_prefetch=0,
            grid=(P, bpg),
            in_specs=[pl.BlockSpec(
                (tr, C),
                # Clamp so tail blocks of the last group stay in bounds; their
                # duplicated contribution is zeroed by the in-kernel mask.
                lambda p, j: (jnp.minimum(p * bpg + j, n_blocks - 1), 0))],
            out_specs=pl.BlockSpec((1, acc_rows, C), lambda p, j: (p, 0, 0)),
            scratch_shapes=[pltpu.VMEM((acc_rows, C), jnp.float32)],
        ),
        compiler_params=pltpu.CompilerParams(
            dimension_semantics=("parallel", "arbitrary"),
            vmem_limit_bytes=vmem_limit),
        cost_estimate=cost,
    )(x)

    return jnp.sum(partials) / jnp.float32(T)


def entropy_loss_ref(x, eps=1e-12):
    loss = -x * jnp.log(x + eps)
    return jnp.mean(jnp.sum(loss, axis=-1))


if __name__ == "__main__":
    key = jax.random.PRNGKey(0)

    # Shapes implied by the module: x is (T, M) attention weights.
    T, M = 8, 32
    logits = jax.random.normal(key, (T, M), dtype=jnp.float32)
    x = jax.nn.softmax(logits, axis=-1)

    out = jax.block_until_ready(entropy_loss(x))
    ref = entropy_loss_ref(x)
    assert jnp.allclose(out, ref, rtol=1e-5, atol=1e-6), (out, ref)

    # Ragged shape + tiny forced blocks + forced 2 parallel groups: exercises
    # the partial-block mask, block-index clamping, the masked/unmasked
    # pl.when paths and multi-group partial sums on any chip generation.
    T2, M2 = 37, 96
    x2 = jax.nn.softmax(
        jax.random.normal(jax.random.PRNGKey(0), (T2, M2), dtype=jnp.float32),
        axis=-1)
    out2 = jax.block_until_ready(
        entropy_loss(x2, target_block_bytes=4096, num_groups=2))
    ref2 = entropy_loss_ref(x2)
    assert jnp.allclose(out2, ref2, rtol=1e-5, atol=1e-6), (out2, ref2)

    # bf16 path (tile rows rounded to a multiple of 16 for sublane packing).
    x3 = x2.astype(jnp.bfloat16)
    out3 = jax.block_until_ready(entropy_loss(x3, target_block_bytes=8192))
    ref3 = entropy_loss_ref(x3.astype(jnp.float32))
    assert jnp.allclose(out3, ref3, rtol=2e-2, atol=2e-3), (out3, ref3)

    print("KERNEL_OK")
</pallas_src>

<mosaic_0001>
module attributes {stable_mosaic.version = 11 : i64} {
  func.func @_entropy_kernel(%arg0: i32, %arg1: i32, %arg2: memref<1x256xf32, #tpu.memory_space<vmem>>, %arg3: memref<1x1x256xf32, #tpu.memory_space<vmem>>, %arg4: memref<1x256xf32, #tpu.memory_space<vmem>>) attributes {dimension_semantics = [#tpu.dimension_semantics<parallel>, #tpu.dimension_semantics<arbitrary>], iteration_bounds = array<i64: 1, 1>, scalar_prefetch = 0 : i64, scratch_operands = 1 : i64, tpu.core_type = #tpu.core_type<tc>, window_params = [{transform_indices = @transform_0, window_bounds = array<i64: 1, 256>}, {transform_indices = @transform_1, window_bounds = array<i64: 1, 1, 256>}]} {
    %c0_i32 = arith.constant 0 : i32
    %0 = arith.cmpi eq, %arg1, %c0_i32 : i32
    %1 = arith.extui %0 : i1 to i32
    %c0_i32_0 = arith.constant 0 : i32
    %2 = arith.cmpi ne, %1, %c0_i32_0 : i32
    scf.if %2 {
      %cst_9 = arith.constant 0.000000e+00 : f32
      %16 = vector.broadcast %cst_9 : f32 to vector<1x256xf32>
      %c0_10 = arith.constant 0 : index
      %c0_11 = arith.constant 0 : index
      %17 = vector.load %arg4[%c0_10, %c0_11] : memref<1x256xf32, #tpu.memory_space<vmem>>, vector<1x256xf32>
      tpu.vector_store %arg4[%c0_10, %c0_11], %16 {strides = array<i32>} : memref<1x256xf32, #tpu.memory_space<vmem>>, vector<1x256xf32>,
    } else {
    }
    %c0 = arith.constant 0 : index
    %c0_1 = arith.constant 0 : index
    %3 = vector.load %arg2[%c0, %c0_1] : memref<1x256xf32, #tpu.memory_space<vmem>>, vector<1x256xf32>
    %cst = arith.constant 0.000000e+00 : f32
    %4 = vector.broadcast %cst : f32 to vector<1x256xf32>
    %5 = arith.subf %4, %3 : vector<1x256xf32>
    %cst_2 = arith.constant 9.99999996E-13 : f32
    %6 = vector.broadcast %cst_2 : f32 to vector<1x256xf32>
    %7 = arith.addf %3, %6 : vector<1x256xf32>
    %8 = math.log %7 : vector<1x256xf32>
    %9 = arith.mulf %5, %8 : vector<1x256xf32>
    %c0_3 = arith.constant 0 : index
    %c0_4 = arith.constant 0 : index
    %10 = vector.load %arg4[%c0_3, %c0_4] : memref<1x256xf32, #tpu.memory_space<vmem>>, vector<1x256xf32>
    %11 = arith.addf %10, %9 : vector<1x256xf32>
    %c0_5 = arith.constant 0 : index
    %c0_6 = arith.constant 0 : index
    %12 = vector.load %arg4[%c0_5, %c0_6] : memref<1x256xf32, #tpu.memory_space<vmem>>, vector<1x256xf32>
    tpu.vector_store %arg4[%c0_5, %c0_6], %11 {strides = array<i32>} : memref<1x256xf32, #tpu.memory_space<vmem>>, vector<1x256xf32>,
    %c0_i32_7 = arith.constant 0 : i32
    %13 = arith.cmpi eq, %arg1, %c0_i32_7 : i32
    %14 = arith.extui %13 : i1 to i32
    %c0_i32_8 = arith.constant 0 : i32
    %15 = arith.cmpi ne, %14, %c0_i32_8 : i32
    scf.if %15 {
      %c0_9 = arith.constant 0 : index
      %c0_10 = arith.constant 0 : index
      %16 = vector.load %arg4[%c0_9, %c0_10] : memref<1x256xf32, #tpu.memory_space<vmem>>, vector<1x256xf32>
      %c0_11 = arith.constant 0 : index
      %c0_12 = arith.constant 0 : index
      %c0_13 = arith.constant 0 : index
      %17 = vector.load %arg3[%c0_11, %c0_12, %c0_13] : memref<1x1x256xf32, #tpu.memory_space<vmem>>, vector<1x1x256xf32>
      %18 = vector.shape_cast %17 : vector<1x1x256xf32> to vector<1x256xf32>
      %19 = vector.shape_cast %16 : vector<1x256xf32> to vector<1x1x256xf32>
      tpu.vector_store %arg3[%c0_11, %c0_12, %c0_13], %19 {strides = array<i32>} : memref<1x1x256xf32, #tpu.memory_space<vmem>>, vector<1x1x256xf32>,
    } else {
    }
    return
  }
  func.func @transform_0(%arg0: i32, %arg1: i32) -> (i32, i32) {
    %c1_i32 = arith.constant 1 : i32
    %0 = arith.muli %arg0, %c1_i32 : i32
    %1 = arith.addi %0, %arg1 : i32
    %c0_i32 = arith.constant 0 : i32
    %2 = arith.minsi %1, %c0_i32 : i32
    %c0_i32_0 = arith.constant 0 : i32
    %c0_i32_1 = arith.constant 0 : i32
    return %2, %c0_i32_0 : i32, i32
  }
  func.func @transform_1(%arg0: i32, %arg1: i32) -> (i32, i32, i32) {
    %c0_i32 = arith.constant 0 : i32
    %c0_i32_0 = arith.constant 0 : i32
    %c0_i32_1 = arith.constant 0 : i32
    return %arg0, %c0_i32, %c0_i32_0 : i32, i32, i32
  }
}

</mosaic_0001>

<bundles_post_ra>
// kernel: tpu_custom_call.1
= control target key start
LH: loop header
LB: loop body
LE: loop exit
PB: predicated region body
PF: predicated region fallthrough
CT: control target
= control target key end

     0   :  { %6 = vsyncpa [#allocation4], 0  ;;  %s152_s0 = inlined_call_operand.hbm [shape: f32[1,256], index: 0, kind: input, shape index: {}]   ;;  %s153_s1 = inlined_call_operand.hbm [shape: f32[1,1,256], index: 1, kind: output, shape index: {}]  }
   0x1   :  { %7 = vsyncpa [#allocation5], 0  ;;  %s123_s6 = smov [#allocation3]  }
   0x2   :  { %s20_s7 = sshll.u32 %s123_s6, 4  ;;  %s21_s7 = int_to_ptr.vmem [resolvable:$true] %s20_s7 }
   0x3   :  { %s87_s8 = scalar_lea.vmem %s21_s7, 32  ;;  %p92_p1 = scmp.lt.s32.totalorder %s21_s7, %s21_s7 }
   0x4   :  { %p88_p0 = scmp.ne.s32.totalorder %s21_s7, %s87_s8  ;;  %p93_p2 = scmp.lt.s32.totalorder %s87_s8, %s87_s8 }
   0x6   :  { %p94_p3 = por %p93_p2, %p92_p1 }
   0x8   :  { %p95_p4 = pnand %p94_p3, %p88_p0 }
   0xa   :  { %98 = shalt.err (!%p95_p4)
}
   0xb   :  { %23 = dma.hbm_to_vmem [thread:$0]  %s152_s0, 32, %s21_s7, [#allocation4]  }
   0xc   :  { %119 = dma.done.wait [#allocation4], 32  }
   0xd   :  { %120 = vsyncadd [#allocation4], 4294967264  ;;  %v34_v0 = vlaneseq  ;;  %v124_v2 = vmov 0.0   ;;  %v39_v3 = vld [vmem:[#allocation3] sm:$0x3]  ;;  %s125_s0 = smov [#allocation6]  }
   0xe   :  { %v41_v4 = vadd.f32 1e-12, %v39_v3  ;;  %v40_v5 = vsub.f32 0.0, %v39_v3  ;;  %s63_s11 = sshll.u32 %s125_s0, 4  ;;  %s64_s11 = int_to_ptr.vmem [resolvable:$true] %s63_s11 }
   0xf   :  { %vm139_vm0 = vcmp.lt.s32.totalorder %v34_v0, 256  ;;  %s99_s12 = scalar_lea.vmem %s64_s11, 32  ;;  %p104_p6 = scmp.lt.s32.totalorder %s64_s11, %s64_s11 }
  0x10   :  { %38 = vst.msk [vmem:[#allocation2] sm:$0x3] %vm139_vm0, %v124_v2  ;;  %77 = vlog2.f32 %v41_v4  ;;  %p100_p5 = scmp.ne.s32.totalorder %s64_s11, %s99_s12  ;;  %p105_p7 = scmp.lt.s32.totalorder %s99_s12, %s99_s12 }
  0x12   :  { %p106_p8 = por %p105_p7, %p104_p6 }
  0x14   :  { %p107_p9 = pnand %p106_p8, %p100_p5 }
  0x17   :  { %v45_v8 = vld [vmem:[#allocation2] sm:$0x3] }
  0x1d   :  { %v78_v6 = vpop.eup %77 }
  0x1e   :  { %v43_v7 = vmul.f32 0.6931472, %v78_v6 }
  0x20   :  { %v44_v9 = vmul.f32 %v43_v7, %v40_v5 }
  0x22   :  { %v46_v10 = vadd.f32 %v45_v8, %v44_v9 }
  0x24   :  { %51 = vst.msk [vmem:[#allocation2] sm:$0x3] %vm139_vm0, %v46_v10 }
  0x2b   :  { %v55_v11 = vld [vmem:[#allocation2] sm:$0x3] }
  0x2c   :  { %56 = vst.msk [vmem:[#allocation6] sm:$0x3] %vm139_vm0, %v55_v11 }
  0x2d   :  { %110 = shalt.err (!%p107_p9)
}
  0x2e   :  { %66 = dma.vmem_to_hbm [thread:$0]  %s64_s11, 32, %s153_s1, [#allocation5]  }
  0x2f   :  { %121 = dma.done.wait [#allocation5], 32  }
  0x30   :  { %122 = vsyncadd [#allocation5], 4294967264 }
  0x31   :  { %70 = vsyncpa [#allocation4], 1 }
  0x32   :  { %71 = vsyncpa [#allocation5], 1 }

</bundles_post_ra>
